<compile_context>
chip_gen: v7x
topology: tpu7x:2x2x1
jax: 0.10.0
libtpu: 0.0.40
codegen_flags: <defaults>
</compile_context>

<pallas_src>
import math

import jax
import jax.numpy as jnp
from jax.experimental import pallas as pl
from jax.experimental.pallas import tpu as pltpu


def _mask_mul_kernel(mw_ref, x_ref, o_ref):
    """mw_ref: (1, lane) masked-weight row; x_ref / o_ref: (row_tile, lane)."""
    o_ref[...] = x_ref[...] * mw_ref[...]


def _choose_lane(n_elems, w, target=8192):
    """Largest lane = k * lcm(w, 128) <= target that divides n_elems, else None."""
    base = (w * 128) // math.gcd(w, 128)
    if n_elems % base != 0:
        return None
    max_k = max(1, target // base)
    for k in range(max_k, 0, -1):
        if n_elems % (base * k) == 0:
            return base * k
    return base


def mask_forward(image, weight, pruned):
    """Pallas implementation of Mask.forward(image)."""
    B, C, H, W = image.shape
    assert weight.shape == (W,), "weight must lie along the last image dim"
    N = B * C * H * W
    itemsize = jnp.dtype(image.dtype).itemsize

    # --- grid-invariant mask math, hoisted out of the kernel (O(W)) ----------
    mw = jnp.where(pruned, jnp.zeros_like(weight), weight).astype(image.dtype)

    # --- lane-dense 2-D view --------------------------------------------------
    lane = _choose_lane(N, W)
    if lane is not None:
        rows = N // lane
        reps = lane // W
    else:
        # Fallback: (B*C, H*W) view; last dim is the full array dim so the
        # BlockSpec stays legal even if H*W is not a multiple of 128.
        lane, rows, reps = H * W, B * C, H
    mw_row = jnp.tile(mw, reps).reshape(1, lane)
    x2 = image.reshape(rows, lane)

    # --- VMEM budget / tile sizing (generation aware) -------------------------
    try:
        vmem_cap = int(getattr(pltpu.get_tpu_info(), "vmem_capacity_bytes", 64 << 20))
    except Exception:
        vmem_cap = 64 << 20  # conservative: v7x per-TensorCore VMEM
    vmem_limit = int(min(vmem_cap * 3 // 4, 100 << 20))
    # 4 live data blocks: 2 double-buffered input blocks + 2 output blocks,
    # leave ~2 MiB headroom for the mw row + compiler scratch.
    block_budget = max(1, (vmem_limit - (2 << 20)) // 4)
    rows_fit = max(1, block_budget // max(1, lane * itemsize))

    sub = max(8, 32 // itemsize)  # sublane tile: 8 f32, 16 bf16, 32 int8/fp8
    if rows <= sub:
        row_tile = rows  # single tile; block dim equals full array dim -> legal
    else:
        row_tile = min(rows_fit, rows)
        if rows >= 2 * sub:
            # Ensure >= 2 grid steps so the "parallel" axis can shard across
            # v7x's two TensorCores (free elsewhere: one extra ~0.35us step).
            half = -(-rows // 2)
            half = -(-half // sub) * sub
            row_tile = min(row_tile, half)
        row_tile = max(sub, (row_tile // sub) * sub)

    needed = (4 * row_tile + 2) * lane * itemsize + (2 << 20)
    vmem_limit = int(min(max(vmem_limit, needed), vmem_cap))

    grid = (pl.cdiv(rows, row_tile),)

    out2 = pl.pallas_call(
        _mask_mul_kernel,
        out_shape=jax.ShapeDtypeStruct((rows, lane), image.dtype),
        grid=grid,
        in_specs=[
            pl.BlockSpec((1, lane), lambda i: (0, 0)),          # masked weight row
            pl.BlockSpec((row_tile, lane), lambda i: (i, 0)),   # image slab
        ],
        out_specs=pl.BlockSpec((row_tile, lane), lambda i: (i, 0)),
        compiler_params=pltpu.CompilerParams(
            dimension_semantics=("parallel",),
            vmem_limit_bytes=vmem_limit,
        ),
    )(mw_row, x2)

    return out2.reshape(B, C, H, W)


def prune(weight, pruned, num, thres=1.0, random_scale=0.0, key=None):
    """Functional plain-JAX version of Mask.prune (updates the `pruned` buffer).

    # TODO(synk): data-dependent top-k + masked scatter (stateful buffer update)
    # has no clean Pallas TPU equivalent; kept in plain JAX.
    """
    if num == 0:
        return pruned
    w = jnp.abs(weight)
    big = jnp.maximum(jnp.asarray(random_scale, w.dtype), jnp.max(w)) + thres
    w = jnp.where(pruned, big, w)
    w = jnp.where(w >= thres, big, w)
    if key is not None and random_scale > 0:
        rand = jax.random.uniform(key, w.shape, dtype=w.dtype) * random_scale
    else:
        rand = jnp.zeros_like(w)
    _, ind = jax.lax.top_k(-(w - rand), num)
    selected = w[ind] < thres
    return pruned.at[ind].set(jnp.where(selected, True, pruned[ind]))


if __name__ == "__main__":
    key = jax.random.PRNGKey(0)
    k1, k2 = jax.random.split(key, 2)

    # Module shape / small test shapes: weight over W=16, image NCHW (2,4,16,16).
    S = 16
    B, C, H = 2, 4, 16

    # Module init is weight=ones, pruned=zeros; use a random (deterministic)
    # weight plus one prune() step so the mask is non-trivial.
    weight = jax.random.normal(k1, (S,), dtype=jnp.float32)
    pruned = jnp.zeros((S,), dtype=bool)
    pruned = prune(weight, pruned, num=6, thres=0.5)

    image = jax.random.normal(k2, (B, C, H, S), dtype=jnp.float32)

    out = mask_forward(image, weight, pruned)
    out = jax.block_until_ready(out)

    # Plain-JAX reference of Mask.forward.
    ref = image * jnp.where(pruned, 0.0, weight)[None, None, None, :]
    assert out.shape == (B, C, H, S)
    assert jnp.allclose(out, ref, atol=1e-5, rtol=1e-5), "kernel mismatch vs reference"

    print("KERNEL_OK")
</pallas_src>

<mosaic_0001>
module attributes {stable_mosaic.version = 11 : i64} {
  func.func @_mask_mul_kernel(%arg0: i32, %arg1: memref<1x2048xf32, #tpu.memory_space<vmem>>, %arg2: memref<1x2048xf32, #tpu.memory_space<vmem>>, %arg3: memref<1x2048xf32, #tpu.memory_space<vmem>>) attributes {dimension_semantics = [#tpu.dimension_semantics<parallel>], iteration_bounds = array<i64: 1>, scalar_prefetch = 0 : i64, scratch_operands = 0 : i64, tpu.core_type = #tpu.core_type<tc>, window_params = [{pipeline_mode = #tpu.pipeline_mode<synchronous>, transform_indices = @transform_0, window_bounds = array<i64: 1, 2048>}, {transform_indices = @transform_1, window_bounds = array<i64: 1, 2048>}, {transform_indices = @transform_2, window_bounds = array<i64: 1, 2048>}]} {
    %c0 = arith.constant 0 : index
    %c0_0 = arith.constant 0 : index
    %0 = vector.load %arg2[%c0, %c0_0] : memref<1x2048xf32, #tpu.memory_space<vmem>>, vector<1x2048xf32>
    %c0_1 = arith.constant 0 : index
    %c0_2 = arith.constant 0 : index
    %1 = vector.load %arg1[%c0_1, %c0_2] : memref<1x2048xf32, #tpu.memory_space<vmem>>, vector<1x2048xf32>
    %2 = arith.mulf %0, %1 : vector<1x2048xf32>
    %c0_3 = arith.constant 0 : index
    %c0_4 = arith.constant 0 : index
    %3 = vector.load %arg3[%c0_3, %c0_4] : memref<1x2048xf32, #tpu.memory_space<vmem>>, vector<1x2048xf32>
    tpu.vector_store %arg3[%c0_3, %c0_4], %2 {strides = array<i32>} : memref<1x2048xf32, #tpu.memory_space<vmem>>, vector<1x2048xf32>,
    return
  }
  func.func @transform_0(%arg0: i32) -> (i32, i32) {
    %c0_i32 = arith.constant 0 : i32
    %c0_i32_0 = arith.constant 0 : i32
    %c0_i32_1 = arith.constant 0 : i32
    return %c0_i32, %c0_i32_0 : i32, i32
  }
  func.func @transform_1(%arg0: i32) -> (i32, i32) {
    %c0_i32 = arith.constant 0 : i32
    %c0_i32_0 = arith.constant 0 : i32
    return %arg0, %c0_i32 : i32, i32
  }
  func.func @transform_2(%arg0: i32) -> (i32, i32) {
    %c0_i32 = arith.constant 0 : i32
    %c0_i32_0 = arith.constant 0 : i32
    return %arg0, %c0_i32 : i32, i32
  }
}

</mosaic_0001>

<bundles_post_ra>
// kernel: tpu_custom_call.1
= control target key start
LH: loop header
LB: loop body
LE: loop exit
PB: predicated region body
PF: predicated region fallthrough
CT: control target
= control target key end

     0   :  { %7 = vsyncpa [#allocation3], 0  ;;  %s189_s0 = inlined_call_operand.hbm [shape: f32[1,2048], index: 0, kind: input, shape index: {}]   ;;  %s190_s1 = inlined_call_operand.hbm [shape: f32[1,2048], index: 1, kind: input, shape index: {}]   ;;  %s191_s2 = inlined_call_operand.hbm [shape: f32[1,2048], index: 2, kind: output, shape index: {}]  }
   0x1   :  { %8 = vsyncpa [#allocation6], 0 }
   0x2   :  { %9 = vsyncpa [#allocation4], 0  ;;  %s135_s9 = smov [#allocation2]   ;;  %s136_s11 = smov [#allocation5]  }
   0x3   :  { %s16_s10 = sshll.u32 %s135_s9, 4  ;;  %s26_s12 = sshll.u32 %s136_s11, 4  ;;  %s17_s10 = int_to_ptr.vmem [resolvable:$true] %s16_s10  ;;  %s27_s12 = int_to_ptr.vmem [resolvable:$true] %s26_s12 }
   0x4   :  { %s63_s15 = scalar_lea.hbm %s189_s0, 256 }
   0x5   :  { %p64_p0 = scmp.ne.s32.totalorder %s189_s0, %s63_s15  ;;  %p67_p1 = scmp.lt.u32.totalorder %s63_s15, %s189_s0 }
   0x7   :  { %p69_p2 = pnand %p67_p1, %p64_p0 }
   0x9   :  { %72 = shalt.err (!%p69_p2)
}
   0xa   :  { %s73_s20 = scalar_lea.vmem %s17_s10, 256  ;;  %p78_p4 = scmp.lt.s32.totalorder %s17_s10, %s17_s10 }
   0xb   :  { %p74_p3 = scmp.ne.s32.totalorder %s17_s10, %s73_s20  ;;  %p79_p5 = scmp.lt.s32.totalorder %s73_s20, %s73_s20 }
   0xd   :  { %p80_p6 = por %p79_p5, %p78_p4 }
   0xf   :  { %p81_p7 = pnand %p80_p6, %p74_p3 }
  0x11   :  { %84 = shalt.err (!%p81_p7)
}
  0x12   :  { %19 = dma.hbm_to_vmem [thread:$0]  %s189_s0, 256, %s17_s10, [#allocation3]  }
  0x13   :  { %s85_s25 = scalar_lea.hbm %s190_s1, 256 }
  0x14   :  { %p86_p8 = scmp.ne.s32.totalorder %s190_s1, %s85_s25  ;;  %p89_p9 = scmp.lt.u32.totalorder %s85_s25, %s190_s1 }
  0x16   :  { %p91_p10 = pnand %p89_p9, %p86_p8 }
  0x18   :  { %94 = shalt.err (!%p91_p10)
}
  0x19   :  { %s95_s30 = scalar_lea.vmem %s27_s12, 256  ;;  %p100_p12 = scmp.lt.s32.totalorder %s27_s12, %s27_s12 }
  0x1a   :  { %p96_p11 = scmp.ne.s32.totalorder %s27_s12, %s95_s30  ;;  %p101_p13 = scmp.lt.s32.totalorder %s95_s30, %s95_s30 }
  0x1c   :  { %p102_p0 = por %p101_p13, %p100_p12 }
  0x1e   :  { %p103_p1 = pnand %p102_p0, %p96_p11 }
  0x20   :  { %106 = shalt.err (!%p103_p1)
}
  0x21   :  { %29 = dma.hbm_to_vmem [thread:$0]  %s190_s1, 256, %s27_s12, [#allocation6]  }
  0x22   :  { %129 = dma.done.wait [#allocation3], 256  }
  0x23   :  { %130 = vsyncadd [#allocation3], 4294967040 }
  0x24   :  { %131 = dma.done.wait [#allocation6], 256  }
  0x25   :  { %132 = vsyncadd [#allocation6], 4294967040  ;;  %s137_s4 = smov [#allocation7]   ;;  %v36_v0 = vld [vmem:[#allocation5] sm:$0xff]  ;;  %v38_v1 = vld [vmem:[#allocation2] sm:$0xff] }
  0x26   :  { %s50_s5 = sshll.u32 %s137_s4, 4  ;;  %v37_v2 = vld [vmem:[#allocation5 + $0x8] sm:$0xff]  ;;  %v40_v3 = vmul.f32 %v38_v1, %v36_v0  ;;  %v39_v4 = vld [vmem:[#allocation2 + $0x8] sm:$0xff]  ;;  %s51_s5 = int_to_ptr.vmem [resolvable:$true] %s50_s5 }
  0x27   :  { %v41_v5 = vmul.f32 %v39_v4, %v37_v2  ;;  %s107_s6 = scalar_lea.vmem %s51_s5, 256  ;;  %p112_p3 = scmp.lt.s32.totalorder %s51_s5, %s51_s5 }
  0x28   :  { %42 = vst [vmem:[#allocation7] sm:$0xff] %v40_v3  ;;  %p108_p2 = scmp.ne.s32.totalorder %s51_s5, %s107_s6  ;;  %p113_p4 = scmp.lt.s32.totalorder %s107_s6, %s107_s6 }
  0x29   :  { %43 = vst [vmem:[#allocation7 + $0x8] sm:$0xff] %v41_v5 }
  0x2a   :  { %p114_p5 = por %p113_p4, %p112_p3 }
  0x2c   :  { %p115_p6 = pnand %p114_p5, %p108_p2 }
  0x2e   :  { %118 = shalt.err (!%p115_p6)
}
  0x2f   :  { %s119_s8 = scalar_lea.hbm %s191_s2, 256 }
  0x30   :  { %p120_p7 = scmp.ne.s32.totalorder %s191_s2, %s119_s8  ;;  %p123_p8 = scmp.lt.u32.totalorder %s119_s8, %s191_s2 }
  0x32   :  { %p125_p9 = pnand %p123_p8, %p120_p7 }
  0x34   :  { %128 = shalt.err (!%p125_p9)
}
  0x35   :  { %53 = dma.vmem_to_hbm [thread:$0]  %s51_s5, 256, %s191_s2, [#allocation4]  }
  0x36   :  { %133 = dma.done.wait [#allocation4], 256  }
  0x37   :  { %134 = vsyncadd [#allocation4], 4294967040 }
  0x38   :  { %57 = vsyncpa [#allocation3], 1 }
  0x39   :  { %58 = vsyncpa [#allocation6], 1 }
  0x3a   :  { %59 = vsyncpa [#allocation4], 1 }

</bundles_post_ra>
